<compile_context>
chip_gen: v7x
topology: tpu7x:2x2x1
jax: 0.10.0
libtpu: 0.0.40
codegen_flags: <defaults>
</compile_context>

<pallas_src>
import functools

import numpy as np
import jax
import jax.numpy as jnp
from jax.experimental import pallas as pl
from jax.experimental.pallas import tpu as pltpu


def _shift_rows(a, j):
    """Register-level row shift: result[i] = a[(i + j) % T].

    Wrapped rows (and rows whose conv window crosses an example boundary)
    never reach a valid pooled output, so the wrap is harmless.
    """
    if j == 0:
        return a
    return jnp.concatenate([a[j:, :], a[:j, :]], axis=0)


# ----------------------------------------------------------------------------
# Fused Pallas kernel: both branches + kmax pooling + fc head (no scratch)
# ----------------------------------------------------------------------------
def _rcnn_kernel(t_rnn_ref, t_em_ref, c_rnn_ref, c_em_ref,
                 w1_ref, b1_ref, w2_ref, b2_ref, wfc_ref, bfc_ref,
                 o_ref, *, B, L, k1, k2):
    O = b1_ref.shape[1]

    # ---- assemble the flat (T, Cin) channels-last input in registers --------
    # Rows: [title examples | content examples], each example contributes L rows.
    rnn = jnp.concatenate([t_rnn_ref[...], c_rnn_ref[...]], axis=0)   # (T, Crnn)
    em = jnp.concatenate([t_em_ref[...], c_em_ref[...]], axis=0)      # (T, E)
    x = jnp.concatenate([rnn, em], axis=1)                            # (T, Cin)

    # ---- Conv1d #1 (BN scale pre-folded into w1) + shift + ReLU --------------
    # Full-T im2col in registers: k1 taps packed along lanes -> ONE MXU matmul.
    xc1 = jnp.concatenate([_shift_rows(x, j) for j in range(k1)], axis=1)
    h1 = jnp.dot(xc1, w1_ref[...], preferred_element_type=jnp.float32)
    h1 = jnp.maximum(h1 + b1_ref[...], 0.0)                           # (T, O)

    # ---- Conv1d #2 (BN scale pre-folded into w2) + shift + ReLU --------------
    xc2 = jnp.concatenate([_shift_rows(h1, j) for j in range(k2)], axis=1)
    h2 = jnp.dot(xc2, w2_ref[...], preferred_element_type=jnp.float32)
    h2 = jnp.maximum(h2 + b2_ref[...], 0.0)                           # (T, O)

    # ---- kmax_pooling(k=1): per-example global max over the VALID rows ------
    # Valid conv-output length per example; rows past it (boundary-crossing or
    # wrapped windows) are simply never read.
    Lv = L - (k1 - 1) - (k2 - 1)
    pooled = [jnp.max(h2[n * L:n * L + Lv, :], axis=0, keepdims=True)
              for n in range(2 * B)]                                  # 2B x (1, O)
    title_feat = jnp.concatenate(pooled[:B], axis=0)                  # (B, O)
    content_feat = jnp.concatenate(pooled[B:], axis=0)                # (B, O)

    # ---- fc head: [title | content] @ Wfc = title @ Wfc[:O] + content @ Wfc[O:]
    logits = (jnp.dot(title_feat, wfc_ref[pl.ds(0, O), :],
                      preferred_element_type=jnp.float32)
              + jnp.dot(content_feat, wfc_ref[pl.ds(O, O), :],
                        preferred_element_type=jnp.float32)
              + bfc_ref[...])
    o_ref[...] = logits.astype(o_ref.dtype)


# ----------------------------------------------------------------------------
# Wrapper: one pallas_call for the whole model
# ----------------------------------------------------------------------------
@jax.jit
def rcnn_forward(title_rnn, title_em, content_rnn, content_em, params):
    """Inputs: (B, L, 2H) rnn outputs and (B, L, E) embeddings -> (B, C) logits."""
    B, L, Crnn = title_rnn.shape
    E = title_em.shape[2]
    k1, Cin, O = params['w1'].shape
    k2 = params['w2'].shape[0]
    C = params['wfc'].shape[1]
    assert Cin == Crnn + E
    assert L >= k1 + k2 - 1

    # Eval-mode BN: fold the per-channel scale into the conv weights on the
    # host; only the per-channel shift is applied in-kernel.
    w1f = (params['w1'] * params['s1'].reshape(1, 1, O)).reshape(k1 * Cin, O)
    w2f = (params['w2'] * params['s2'].reshape(1, 1, O)).reshape(k2 * O, O)

    kern = functools.partial(_rcnn_kernel, B=B, L=L, k1=k1, k2=k2)
    vmem = pl.BlockSpec(memory_space=pltpu.MemorySpace.VMEM)
    return pl.pallas_call(
        kern,
        out_shape=jax.ShapeDtypeStruct((B, C), jnp.float32),
        in_specs=[vmem] * 10,
        out_specs=vmem,
    )(
        title_rnn.reshape(B * L, Crnn), title_em.reshape(B * L, E),
        content_rnn.reshape(B * L, Crnn), content_em.reshape(B * L, E),
        w1f, params['b1'], w2f, params['b2'],
        params['wfc'], params['bfc'])


# ----------------------------------------------------------------------------
# Deterministic synthetic parameters (BN folded into scale/shift)
# ----------------------------------------------------------------------------
def _fold_bn(bias, gamma, beta, mean, var, eps=1e-5):
    scale = gamma / jnp.sqrt(var + eps)
    shift = (bias - mean) * scale + beta
    return scale, shift


def init_params(key, Crnn, E, O, C, k):
    Cin = Crnn + E
    ks = jax.random.split(key, 14)
    w1 = jax.random.normal(ks[0], (k, Cin, O), jnp.float32) / np.sqrt(Cin * k)
    b1 = 0.1 * jax.random.normal(ks[1], (O,), jnp.float32)
    g1 = 1.0 + 0.1 * jax.random.normal(ks[2], (O,), jnp.float32)
    be1 = 0.1 * jax.random.normal(ks[3], (O,), jnp.float32)
    m1 = 0.05 * jax.random.normal(ks[4], (O,), jnp.float32)
    v1 = jax.random.uniform(ks[5], (O,), jnp.float32, 0.5, 1.5)
    s1, sh1 = _fold_bn(b1, g1, be1, m1, v1)

    w2 = jax.random.normal(ks[6], (k, O, O), jnp.float32) / np.sqrt(O * k)
    b2 = 0.1 * jax.random.normal(ks[7], (O,), jnp.float32)
    g2 = 1.0 + 0.1 * jax.random.normal(ks[8], (O,), jnp.float32)
    be2 = 0.1 * jax.random.normal(ks[9], (O,), jnp.float32)
    m2 = 0.05 * jax.random.normal(ks[10], (O,), jnp.float32)
    v2 = jax.random.uniform(ks[11], (O,), jnp.float32, 0.5, 1.5)
    s2, sh2 = _fold_bn(b2, g2, be2, m2, v2)

    wfc = jax.random.normal(ks[12], (2 * O, C), jnp.float32) / np.sqrt(2 * O)
    bfc = 0.1 * jax.random.normal(ks[13], (C,), jnp.float32)
    return dict(w1=w1, s1=s1.reshape(1, O), b1=sh1.reshape(1, O),
                w2=w2, s2=s2.reshape(1, O), b2=sh2.reshape(1, O),
                wfc=wfc, bfc=bfc.reshape(1, C))


# ----------------------------------------------------------------------------
# Pure-JAX reference (same math, no Pallas) for correctness check
# ----------------------------------------------------------------------------
def rcnn_forward_ref(title_rnn, title_em, content_rnn, content_em, params):
    def conv_bn_relu(x, w, s, b):
        k = w.shape[0]
        L1 = x.shape[1] - k + 1
        acc = sum(jnp.einsum('blc,co->blo', x[:, j:j + L1, :], w[j])
                  for j in range(k))
        return jnp.maximum(acc * s + b, 0.0)

    def branch(x_rnn, x_em):
        x = jnp.concatenate([x_rnn, x_em], axis=-1)
        h1 = conv_bn_relu(x, params['w1'], params['s1'], params['b1'])
        h2 = conv_bn_relu(h1, params['w2'], params['s2'], params['b2'])
        return jnp.max(h2, axis=1)            # kmax_pooling(k=1) == global max

    ft = branch(title_rnn, title_em)
    fc = branch(content_rnn, content_em)
    flat = jnp.concatenate([ft, fc], axis=-1)
    return flat @ params['wfc'] + params['bfc']


# ----------------------------------------------------------------------------
if __name__ == "__main__":
    # opt: hidden_size=16, embedding_dim=8, title_dim=16 -> O = 3*16 = 48;
    #      num_classes=4; seq_len=16, batch=2.
    # Test both kernel sizes the module can use: type_='word' -> k=2, else k=3.
    B, L = 2, 16
    hidden, E = 16, 8
    Crnn = 2 * hidden                  # rnn_out channels = hidden_size * 2
    O = 3 * 16                         # title_dim * 3
    C = 4                              # num_classes

    key = jax.random.PRNGKey(0)
    kp, ka, kb, kc, kd = jax.random.split(key, 5)
    title_rnn = jax.random.normal(ka, (B, L, Crnn), jnp.float32)
    title_em = jax.random.normal(kb, (B, L, E), jnp.float32)
    content_rnn = jax.random.normal(kc, (B, L, Crnn), jnp.float32)
    content_em = jax.random.normal(kd, (B, L, E), jnp.float32)

    for k in (2, 3):                   # 'word' and 'char' configurations
        params = init_params(kp, Crnn, E, O, C, k)
        logits = rcnn_forward(title_rnn, title_em, content_rnn, content_em, params)
        logits = jax.block_until_ready(logits)
        assert logits.shape == (B, C)

        ref = rcnn_forward_ref(title_rnn, title_em, content_rnn, content_em, params)
        np.testing.assert_allclose(np.asarray(logits), np.asarray(ref),
                                   rtol=1e-4, atol=1e-4)

    print("KERNEL_OK")
</pallas_src>

<mosaic_0001>
module attributes {stable_mosaic.version = 11 : i64} {
  func.func @_rcnn_kernel(%arg0: memref<32x32xf32, #tpu.memory_space<vmem>>, %arg1: memref<32x8xf32, #tpu.memory_space<vmem>>, %arg2: memref<32x32xf32, #tpu.memory_space<vmem>>, %arg3: memref<32x8xf32, #tpu.memory_space<vmem>>, %arg4: memref<80x48xf32, #tpu.memory_space<vmem>>, %arg5: memref<1x48xf32, #tpu.memory_space<vmem>>, %arg6: memref<96x48xf32, #tpu.memory_space<vmem>>, %arg7: memref<1x48xf32, #tpu.memory_space<vmem>>, %arg8: memref<96x4xf32, #tpu.memory_space<vmem>>, %arg9: memref<1x4xf32, #tpu.memory_space<vmem>>, %arg10: memref<2x4xf32, #tpu.memory_space<vmem>>) attributes {dimension_semantics = [], scalar_prefetch = 0 : i64, scratch_operands = 0 : i64, tpu.core_type = #tpu.core_type<tc>} {
    %c0 = arith.constant 0 : index
    %c0_0 = arith.constant 0 : index
    %0 = vector.load %arg0[%c0, %c0_0] : memref<32x32xf32, #tpu.memory_space<vmem>>, vector<32x32xf32>
    %c0_1 = arith.constant 0 : index
    %c0_2 = arith.constant 0 : index
    %1 = vector.load %arg2[%c0_1, %c0_2] : memref<32x32xf32, #tpu.memory_space<vmem>>, vector<32x32xf32>
    %2 = tpu.concatenate %0, %1 in 0 : vector<32x32xf32>, vector<32x32xf32> -> vector<64x32xf32>
    %c0_3 = arith.constant 0 : index
    %c0_4 = arith.constant 0 : index
    %3 = vector.load %arg1[%c0_3, %c0_4] : memref<32x8xf32, #tpu.memory_space<vmem>>, vector<32x8xf32>
    %c0_5 = arith.constant 0 : index
    %c0_6 = arith.constant 0 : index
    %4 = vector.load %arg3[%c0_5, %c0_6] : memref<32x8xf32, #tpu.memory_space<vmem>>, vector<32x8xf32>
    %5 = tpu.concatenate %3, %4 in 0 : vector<32x8xf32>, vector<32x8xf32> -> vector<64x8xf32>
    %6 = tpu.concatenate %2, %5 in 1 : vector<64x32xf32>, vector<64x8xf32> -> vector<64x40xf32>
    %7 = vector.extract_strided_slice %6 {offsets = [1, 0], sizes = [63, 40], strides = [1, 1]} : vector<64x40xf32> to vector<63x40xf32>
    %8 = vector.extract_strided_slice %6 {offsets = [0, 0], sizes = [1, 40], strides = [1, 1]} : vector<64x40xf32> to vector<1x40xf32>
    %9 = tpu.concatenate %7, %8 in 0 : vector<63x40xf32>, vector<1x40xf32> -> vector<64x40xf32>
    %10 = tpu.concatenate %6, %9 in 1 : vector<64x40xf32>, vector<64x40xf32> -> vector<64x80xf32>
    %c0_7 = arith.constant 0 : index
    %c0_8 = arith.constant 0 : index
    %11 = vector.load %arg4[%c0_7, %c0_8] : memref<80x48xf32, #tpu.memory_space<vmem>>, vector<80x48xf32>
    %cst = arith.constant dense<0.000000e+00> : vector<64x48xf32>
    %12 = tpu.matmul %10, %11, %cst {dimension_numbers = #tpu.dot_dimension_numbers<[1], [0], [0], [1], [0, 0, 1, 1], [], []>} : vector<64x80xf32>, vector<80x48xf32>, vector<64x48xf32> -> vector<64x48xf32>
    %c0_9 = arith.constant 0 : index
    %c0_10 = arith.constant 0 : index
    %13 = vector.load %arg5[%c0_9, %c0_10] : memref<1x48xf32, #tpu.memory_space<vmem>>, vector<1x48xf32>
    %14 = vector.broadcast %13 : vector<1x48xf32> to vector<64x48xf32>
    %15 = arith.addf %12, %14 : vector<64x48xf32>
    %cst_11 = arith.constant 0.000000e+00 : f32
    %16 = vector.broadcast %cst_11 : f32 to vector<64x48xf32>
    %17 = arith.maximumf %15, %16 : vector<64x48xf32>
    %18 = vector.extract_strided_slice %17 {offsets = [1, 0], sizes = [63, 48], strides = [1, 1]} : vector<64x48xf32> to vector<63x48xf32>
    %19 = vector.extract_strided_slice %17 {offsets = [0, 0], sizes = [1, 48], strides = [1, 1]} : vector<64x48xf32> to vector<1x48xf32>
    %20 = tpu.concatenate %18, %19 in 0 : vector<63x48xf32>, vector<1x48xf32> -> vector<64x48xf32>
    %21 = tpu.concatenate %17, %20 in 1 : vector<64x48xf32>, vector<64x48xf32> -> vector<64x96xf32>
    %c0_12 = arith.constant 0 : index
    %c0_13 = arith.constant 0 : index
    %22 = vector.load %arg6[%c0_12, %c0_13] : memref<96x48xf32, #tpu.memory_space<vmem>>, vector<96x48xf32>
    %cst_14 = arith.constant dense<0.000000e+00> : vector<64x48xf32>
    %23 = tpu.matmul %21, %22, %cst_14 {dimension_numbers = #tpu.dot_dimension_numbers<[1], [0], [0], [1], [0, 0, 1, 1], [], []>} : vector<64x96xf32>, vector<96x48xf32>, vector<64x48xf32> -> vector<64x48xf32>
    %c0_15 = arith.constant 0 : index
    %c0_16 = arith.constant 0 : index
    %24 = vector.load %arg7[%c0_15, %c0_16] : memref<1x48xf32, #tpu.memory_space<vmem>>, vector<1x48xf32>
    %25 = vector.broadcast %24 : vector<1x48xf32> to vector<64x48xf32>
    %26 = arith.addf %23, %25 : vector<64x48xf32>
    %cst_17 = arith.constant 0.000000e+00 : f32
    %27 = vector.broadcast %cst_17 : f32 to vector<64x48xf32>
    %28 = arith.maximumf %26, %27 : vector<64x48xf32>
    %29 = vector.extract_strided_slice %28 {offsets = [0, 0], sizes = [14, 48], strides = [1, 1]} : vector<64x48xf32> to vector<14x48xf32>
    %cst_18 = arith.constant dense<0xFF800000> : vector<48xf32>
    %30 = vector.multi_reduction <maximumf>, %29, %cst_18 [0] : vector<14x48xf32> to vector<48xf32>
    %31 = vector.shape_cast %30 : vector<48xf32> to vector<1x48xf32>
    %32 = vector.extract_strided_slice %28 {offsets = [16, 0], sizes = [14, 48], strides = [1, 1]} : vector<64x48xf32> to vector<14x48xf32>
    %cst_19 = arith.constant dense<0xFF800000> : vector<48xf32>
    %33 = vector.multi_reduction <maximumf>, %32, %cst_19 [0] : vector<14x48xf32> to vector<48xf32>
    %34 = vector.shape_cast %33 : vector<48xf32> to vector<1x48xf32>
    %35 = vector.extract_strided_slice %28 {offsets = [32, 0], sizes = [14, 48], strides = [1, 1]} : vector<64x48xf32> to vector<14x48xf32>
    %cst_20 = arith.constant dense<0xFF800000> : vector<48xf32>
    %36 = vector.multi_reduction <maximumf>, %35, %cst_20 [0] : vector<14x48xf32> to vector<48xf32>
    %37 = vector.shape_cast %36 : vector<48xf32> to vector<1x48xf32>
    %38 = vector.extract_strided_slice %28 {offsets = [48, 0], sizes = [14, 48], strides = [1, 1]} : vector<64x48xf32> to vector<14x48xf32>
    %cst_21 = arith.constant dense<0xFF800000> : vector<48xf32>
    %39 = vector.multi_reduction <maximumf>, %38, %cst_21 [0] : vector<14x48xf32> to vector<48xf32>
    %40 = vector.shape_cast %39 : vector<48xf32> to vector<1x48xf32>
    %41 = tpu.concatenate %31, %34 in 0 : vector<1x48xf32>, vector<1x48xf32> -> vector<2x48xf32>
    %42 = tpu.concatenate %37, %40 in 0 : vector<1x48xf32>, vector<1x48xf32> -> vector<2x48xf32>
    %c0_22 = arith.constant 0 : index
    %c0_23 = arith.constant 0 : index
    %43 = vector.load %arg8[%c0_22, %c0_23] : memref<96x4xf32, #tpu.memory_space<vmem>>, vector<48x4xf32>
    %cst_24 = arith.constant dense<0.000000e+00> : vector<2x4xf32>
    %44 = tpu.matmul %41, %43, %cst_24 {dimension_numbers = #tpu.dot_dimension_numbers<[1], [0], [0], [1], [0, 0, 1, 1], [], []>} : vector<2x48xf32>, vector<48x4xf32>, vector<2x4xf32> -> vector<2x4xf32>
    %c48 = arith.constant 48 : index
    %c0_25 = arith.constant 0 : index
    %45 = vector.load %arg8[%c48, %c0_25] : memref<96x4xf32, #tpu.memory_space<vmem>>, vector<48x4xf32>
    %cst_26 = arith.constant dense<0.000000e+00> : vector<2x4xf32>
    %46 = tpu.matmul %42, %45, %cst_26 {dimension_numbers = #tpu.dot_dimension_numbers<[1], [0], [0], [1], [0, 0, 1, 1], [], []>} : vector<2x48xf32>, vector<48x4xf32>, vector<2x4xf32> -> vector<2x4xf32>
    %47 = arith.addf %44, %46 : vector<2x4xf32>
    %c0_27 = arith.constant 0 : index
    %c0_28 = arith.constant 0 : index
    %48 = vector.load %arg9[%c0_27, %c0_28] : memref<1x4xf32, #tpu.memory_space<vmem>>, vector<1x4xf32>
    %49 = vector.broadcast %48 : vector<1x4xf32> to vector<2x4xf32>
    %50 = arith.addf %47, %49 : vector<2x4xf32>
    %c0_29 = arith.constant 0 : index
    %c0_30 = arith.constant 0 : index
    %51 = vector.load %arg10[%c0_29, %c0_30] : memref<2x4xf32, #tpu.memory_space<vmem>>, vector<2x4xf32>
    tpu.vector_store %arg10[%c0_29, %c0_30], %50 {strides = array<i32>} : memref<2x4xf32, #tpu.memory_space<vmem>>, vector<2x4xf32>,
    return
  }
}

</mosaic_0001>

<bundles_post_ra>
// kernel: rcnn_forward.1
= control target key start
LH: loop header
LB: loop body
LE: loop exit
PB: predicated region body
PF: predicated region fallthrough
CT: control target
= control target key end

     0   :  { %s1012_s17 = smov 32   ;;  %s1311_s0 = inlined_call_operand.vmem [shape: f32[32,32], index: 0, kind: input, shape index: {}]   ;;  %s1312_s1 = inlined_call_operand.vmem [shape: f32[32,8], index: 1, kind: input, shape index: {}]   ;;  %s1313_s2 = inlined_call_operand.vmem [shape: f32[32,32], index: 2, kind: input, shape index: {}]   ;;  %s1314_s3 = inlined_call_operand.vmem [shape: f32[32,8], index: 3, kind: input, shape index: {}]   ;;  %s1315_s4 = inlined_call_operand.vmem [shape: f32[80,48], index: 4, kind: input, shape index: {}]   ;;  %s1316_s5 = inlined_call_operand.vmem [shape: f32[1,48], index: 5, kind: input, shape index: {}]   ;;  %s1317_s6 = inlined_call_operand.vmem [shape: f32[96,48], index: 6, kind: input, shape index: {}]   ;;  %s1318_s7 = inlined_call_operand.vmem [shape: f32[1,48], index: 7, kind: input, shape index: {}]   ;;  %s1319_s8 = inlined_call_operand.vmem [shape: f32[96,4], index: 8, kind: input, shape index: {}]   ;;  %s1320_s9 = inlined_call_operand.vmem [shape: f32[1,4], index: 9, kind: input, shape index: {}]   ;;  %s1321_s10 = inlined_call_operand.hbm [shape: f32[2,4], index: 10, kind: output, shape index: {}]  }
   0x1   :  { %v46_v0 = vld [vmem:[%s1312_s1 + $0x10] sm:$0xff]  ;;  %v44_v1 = vld [vmem:[%s1312_s1] sm:$0xff]  ;;  %v47_v2 = vld [vmem:[%s1312_s1 + $0x18] sm:$0xff] }
   0x2   :  { %64 = vrot.lane.b32.xlu1 %v46_v0, %s1012_s17  ;;  %60 = vrot.lane.b32.xlu0 %v44_v1, %s1012_s17  ;;  %v45_v3 = vld [vmem:[%s1312_s1 + $0x8] sm:$0xff]  ;;  %v48_v5 = vld [vmem:[%s1314_s3] sm:$0xff] }
   0x3   :  { %v49_v4 = vld [vmem:[%s1314_s3 + $0x8] sm:$0xff] }
   0x6   :  { %66 = vrot.lane.b32.xlu1 %v47_v2, %s1012_s17  ;;  %62 = vrot.lane.b32.xlu0 %v45_v3, %s1012_s17 }
   0x7   :  { %15 = vsyncpa [#allocation3], 0  ;;  %v154_v6 = vld [vmem:[%s1315_s4] sm:$0xff]  ;;  %v155_v7 = vld [vmem:[%s1315_s4 + $0x8] sm:$0xff]  ;;  %vm84_vm0 = vcmask 261120   ;;  %vm101_vm1 = vcmask 1046528  }
   0x8   :  { %v156_v8 = vld [vmem:[%s1315_s4 + $0x10] sm:$0xff]  ;;  %v51_v9 = vld [vmem:[%s1314_s3 + $0x18] sm:$0xff]  ;;  %v919_v10 = vpack.c.bf16 %v155_v7, %v154_v6  ;;  %v158_v14 = vld [vmem:[%s1315_s4 + $0x20] sm:$0xff]  ;;  %vm145_vm2 = vcmask 326656   ;;  %vm171_vm3 = vcmask 654336   ;;  %vm360_vm4 = vcmask 392192  }
   0x9   :  { %v157_v11 = vld [vmem:[%s1315_s4 + $0x18] sm:$0xff]  ;;  %v50_v12 = vld [vmem:[%s1314_s3 + $0x10] sm:$0xff]  ;;  %v159_v15 = vld [vmem:[%s1315_s4 + $0x28] sm:$0xff]  ;;  %vm388_vm5 = vcmask 785408   ;;  %vm1016_vm6 = vmmov 0   ;;  %vm527_vm7 = vcmask 390144  }
   0xa   :  { %70 = vrot.lane.b32.xlu1 %v49_v4, %s1012_s17  ;;  %68 = vrot.lane.b32.xlu0 %v48_v5, %s1012_s17  ;;  %v923_v13 = vpack.c.bf16 %v157_v11, %v156_v8  ;;  %v927_v16 = vpack.c.bf16 %v159_v15, %v158_v14  ;;  %v160_v17 = vld [vmem:[%s1315_s4 + $0x30] sm:$0xff]  ;;  %v161_v18 = vld [vmem:[%s1315_s4 + $0x38] sm:$0xff]  ;;  %vm563_vm8 = vcmask 1040384   ;;  %vm732_vm9 = vcmask 25600  }
   0xb   :  { %920 = vmatprep.subr.bf16.mxu0 %v919_v10  ;;  %v931_v19 = vpack.c.bf16 %v161_v18, %v160_v17  ;;  %v162_v20 = vld [vmem:[%s1315_s4 + $0x40] sm:$0xff]  ;;  %v163_v21 = vld [vmem:[%s1315_s4 + $0x48] sm:$0xff]  ;;  %v38_v23 = vld [vmem:[%s1311_s0 + $0x10] sm:$0xff] }
   0xc   :  { %922 = vmatpush3.bf16.msra.mxu0 %v919_v10  ;;  %v935_v22 = vpack.c.bf16 %v163_v21, %v162_v20  ;;  %v36_v26 = vld [vmem:[%s1311_s0] sm:$0xff]  ;;  %v39_v28 = vld [vmem:[%s1311_s0 + $0x18] sm:$0xff]  ;;  %v37_v29 = vld [vmem:[%s1311_s0 + $0x8] sm:$0xff]  ;;  %s1013_s0 = smov 40  }
   0xd   :  { %924 = vmatprep.subr.bf16.mxu0 %v923_v13  ;;  %v41_v38 = vld [vmem:[%s1313_s2 + $0x8] sm:$0xff]  ;;  %v40_v39 = vld [vmem:[%s1313_s2] sm:$0xff]  ;;  %v43_v48 = vld [vmem:[%s1313_s2 + $0x18] sm:$0xff] }
   0xe   :  { %74 = vrot.lane.b32.xlu1 %v51_v9, %s1012_s17  ;;  %72 = vrot.lane.b32.xlu0 %v50_v12, %s1012_s17  ;;  %v42_v49 = vld [vmem:[%s1313_s2 + $0x10] sm:$0xff]  ;;  %v369_v15 = vld [vmem:[%s1317_s6] sm:$0xff] }
   0xf   :  { %v371_v17 = vld [vmem:[%s1317_s6 + $0x10] sm:$0xff]  ;;  %v373_v21 = vld [vmem:[%s1317_s6 + $0x20] sm:$0xff] }
  0x10   :  { %926 = vmatpush3.bf16.msra.mxu0 %v923_v13 }
  0x11   :  { %928 = vmatprep.subr.bf16.mxu0 %v927_v16 }
  0x14   :  { %930 = vmatpush3.bf16.msra.mxu0 %v927_v16  ;;  %v370_v16 = vld [vmem:[%s1317_s6 + $0x8] sm:$0xff] }
  0x15   :  { %932 = vmatprep.subr.bf16.mxu0 %v931_v19  ;;  %v939_v18 = vpack.c.bf16 %v370_v16, %v369_v15 }
  0x17   :  { %940 = vmatprep.subr.bf16.mxu1 %v939_v18 }
  0x18   :  { %934 = vmatpush3.bf16.msra.mxu0 %v931_v19  ;;  %v372_v19 = vld [vmem:[%s1317_s6 + $0x18] sm:$0xff]  ;;  %942 = vmatpush3.bf16.msra.mxu1 %v939_v18 }
  0x19   :  { %936 = vmatprep.subr.bf16.mxu0 %v935_v22  ;;  %v943_v20 = vpack.c.bf16 %v372_v19, %v371_v17 }
  0x1b   :  { %944 = vmatprep.subr.bf16.mxu1 %v943_v20 }
  0x1c   :  { %938 = vmatpush3.bf16.msra.mxu0 %v935_v22  ;;  %v374_v22 = vld [vmem:[%s1317_s6 + $0x28] sm:$0xff]  ;;  %946 = vmatpush3.bf16.msra.mxu1 %v943_v20 }
  0x74   :  { %v65_v24 = vpop.permute.xlu1 %64  ;;  %v61_v25 = vpop.permute.xlu0 %60 }
  0x75   :  { %v87_v27 = vsel %vm84_vm0, %v38_v23, %v65_v24  ;;  %v85_v30 = vsel %vm84_vm0, %v36_v26, %v61_v25  ;;  %v947_v23 = vpack.c.bf16 %v374_v22, %v373_v21  ;;  %v375_v24 = vld [vmem:[%s1317_s6 + $0x30] sm:$0xff]  ;;  %v376_v25 = vld [vmem:[%s1317_s6 + $0x38] sm:$0xff] }
  0x76   :  { %v105_v31 = vrot.slane %v87_v27, 1  ;;  %v102_v36 = vrot.slane %v85_v30, 1  ;;  %v951_v26 = vpack.c.bf16 %v376_v25, %v375_v24 }
  0x77   :  { %948 = vmatprep.subr.bf16.mxu1 %v947_v23 }
  0x78   :  { %v67_v32 = vpop.permute.xlu1 %66  ;;  %v63_v33 = vpop.permute.xlu0 %62  ;;  %950 = vmatpush3.bf16.msra.mxu1 %v947_v23 }
  0x79   :  { %v88_v34 = vsel %vm84_vm0, %v39_v28, %v67_v32  ;;  %v86_v35 = vsel %vm84_vm0, %v37_v29, %v63_v33  ;;  %v378_v28 = vld [vmem:[%s1317_s6 + $0x48] sm:$0xff]  ;;  %952 = vmatprep.subr.bf16.mxu1 %v951_v26  ;;  %v748_v33 = vld [vmem:[%s1316_s5] ss:$0 sm:$0xff]  ;;  %s1014_s5 = smov 48  }
  0x7a   :  { %v103_v37 = vrot.slane %v86_v35, 1  ;;  %v107_v40 = vrot.slane %v88_v34, 1 }
  0x7c   :  { %v71_v41 = vpop.permute.xlu1 %70  ;;  %v69_v42 = vpop.permute.xlu0 %68  ;;  %v106_v43 = vsel %vm101_vm1, %v103_v37, %v105_v31  ;;  %v104_v44 = vsel %vm101_vm1, %v102_v36, %v103_v37  ;;  %v108_v54 = vsel %vm101_vm1, %v105_v31, %v107_v40  ;;  %954 = vmatpush3.bf16.msra.mxu1 %v951_v26  ;;  %v380_v31 = vld [vmem:[%s1317_s6 + $0x58] sm:$0xff]  ;;  %v566_v26 = vld [vmem:[%s1319_s8] sm:$0xff] }
  0x7d   :  { %v90_v45 = vsel %vm84_vm0, %v41_v38, %v71_v41  ;;  %v89_v46 = vsel %vm84_vm0, %v40_v39, %v69_v42  ;;  %123 = vrot.lane.b32.xlu1 %v106_v43, %s1013_s0  ;;  %121 = vrot.lane.b32.xlu0 %v104_v44, %s1013_s0 }
  0x7e   :  { %v109_v47 = vrot.slane %v89_v46, 1  ;;  %v111_v50 = vrot.slane %v90_v45, 1 }
  0x80   :  { %v75_v51 = vpop.permute.xlu1 %74  ;;  %v73_v52 = vpop.permute.xlu0 %72  ;;  %v110_v53 = vsel %vm101_vm1, %v107_v40, %v109_v47  ;;  %v112_v60 = vsel %vm101_vm1, %v109_v47, %v111_v50 }
  0x81   :  { %v92_v55 = vsel %vm84_vm0, %v43_v48, %v75_v51  ;;  %v91_v56 = vsel %vm84_vm0, %v42_v49, %v73_v52  ;;  %127 = vrot.lane.b32.xlu1 %v110_v53, %s1013_s0  ;;  %125 = vrot.lane.b32.xlu0 %v108_v54, %s1013_s0 }
  0x82   :  { %v113_v57 = vrot.slane %v91_v56, 1  ;;  %v115_v58 = vrot.slane %v92_v55, 1 }
  0x84   :  { %v114_v59 = vsel %vm101_vm1, %v111_v50, %v113_v57  ;;  %v119_v61 = vsel %vm101_vm1, %v115_v58, %v102_v36  ;;  %v116_v62 = vsel %vm101_vm1, %v113_v57, %v115_v58 }
  0x85   :  { %131 = vrot.lane.b32.xlu1 %v114_v59, %s1013_s0  ;;  %129 = vrot.lane.b32.xlu0 %v112_v60, %s1013_s0 }
  0x89   :  { %135 = vrot.lane.b32.xlu1 %v119_v61, %s1013_s0  ;;  %133 = vrot.lane.b32.xlu0 %v116_v62, %s1013_s0 }
  0xef   :  { %v124_v63 = vpop.permute.xlu1 %123  ;;  %v122_v0 = vpop.permute.xlu0 %121 }
  0xf0   :  { %v147_v1 = vsel %vm145_vm2, %v86_v35, %v124_v63  ;;  %v146_v2 = vsel %vm145_vm2, %v85_v30, %v122_v0  ;;  %v379_v30 = vld [vmem:[%s1317_s6 + $0x50] sm:$0xff] }
  0xf1   :  { %841 = vmatprep.mubr.msk.f32.mxu0 %vm171_vm3, %v146_v2  ;;  %v959_v32 = vpack.c.bf16 %v380_v31, %v379_v30  ;;  %v568_v30 = vld [vmem:[%s1319_s8 + $0x10] sm:$0xff]  ;;  %v569_v31 = vld [vmem:[%s1319_s8 + $0x18] sm:$0xff] }
  0xf2   :  { %842 = vmatmul.mubr.msk.f32.vlgmr.msra.gmra.mrb[0].mxu0 %vm171_vm3, %v147_v1 }
  0xf3   :  { %v128_v3 = vpop.permute.xlu1 %127  ;;  %v126_v4 = vpop.permute.xlu0 %125 }
  0xf4   :  { %v149_v5 = vsel %vm145_vm2, %v88_v34, %v128_v3  ;;  %v148_v6 = vsel %vm145_vm2, %v87_v27, %v126_v4  ;;  %v377_v27 = vld [vmem:[%s1317_s6 + $0x40] sm:$0xff] }
  0xf5   :  { %844 = vmatprep.mubr.msk.f32.mxu0 %vm171_vm3, %v148_v6  ;;  %v955_v29 = vpack.c.bf16 %v378_v28, %v377_v27  ;;  %v567_v27 = vld [vmem:[%s1319_s8 + $0x8] sm:$0xff] }
  0xf6   :  { %845 = vmatmul.mubr.msk.f32.gmra.mrb[2].mxu0 %vm171_vm3, %v149_v5  ;;  %v973_v28 = vpack.c.bf16 %v567_v27, %v566_v26 }
  0xf7   :  { %v132_v7 = vpop.permute.xlu1 %131  ;;  %v130_v8 = vpop.permute.xlu0 %129  ;;  %956 = vmatprep.subr.bf16.mxu1 %v955_v29 }
  0xf8   :  { %v151_v9 = vsel %vm145_vm2, %v90_v45, %v132_v7  ;;  %v150_v10 = vsel %vm145_vm2, %v89_v46, %v130_v8  ;;  %958 = vmatpush3.bf16.msra.mxu1 %v955_v29  ;;  %v1015_v29 = vmov 0.0|0.0  }
  0xf9   :  { %847 = vmatprep.mubr.msk.f32.mxu0 %vm171_vm3, %v150_v10  ;;  %960 = vmatprep.subr.bf16.mxu1 %v959_v32 }
  0xfa   :  { %848 = vmatmul.mubr.msk.f32.gmra.mrb[4].mxu0 %vm171_vm3, %v151_v9  ;;  %963 = vmatprep.subr.bf16.mxu0 %v1015_v29 }
  0xfb   :  { %v136_v11 = vpop.permute.xlu1 %135  ;;  %v134_v12 = vpop.permute.xlu0 %133 }
  0xfc   :  { %v153_v13 = vsel %vm145_vm2, %v92_v55, %v136_v11  ;;  %v152_v14 = vsel %vm145_vm2, %v91_v56, %v134_v12  ;;  %962 = vmatpush3.bf16.msra.mxu1 %v959_v32  ;;  %v976_v32 = vpack.c.bf16 %v569_v31, %v568_v30 }
  0xfd   :  { %850 = vmatprep.mubr.msk.f32.mxu0 %vm171_vm3, %v152_v14  ;;  %972 = vmatprep.subr.bf16.mxu1 %v1015_v29 }
  0xfe   :  { %851 = vmatmul.mubr.msk.f32.gmra.mrb[6].mxu0 %vm171_vm3, %v153_v13 }
 0x1c5   :  { %v843_v34 = vpop.f32.mrb[0].mxu0 }
 0x1c6   :  { %v268_v35 = vadd.f32 %v843_v34, %v748_v33  ;;  %v262_v36 = vpop.f32.mrb[1].mxu0  ;;  %v573_v34 = vld [vmem:[%s1319_s8 + $0x38] sm:$0xff] }
 0x1c7   :  { %v263_v37 = vadd.f32 %v748_v33, %v262_v36 }
 0x1c8   :  { %v302_v38 = vmax.f32 %v268_v35, 0.0  ;;  %v570_v35 = vld [vmem:[%s1319_s8 + $0x20] sm:$0xff] }
 0x1c9   :  { %v301_v39 = vmax.f32 %v263_v37, 0.0  ;;  %v846_v40 = vpop.f32.mrb[2].mxu0  ;;  %v571_v37 = vld [vmem:[%s1319_s8 + $0x28] sm:$0xff] }
 0x1ca   :  { %v318_v41 = vrot.slane %v302_v38, 1  ;;  %v278_v42 = vadd.f32 %v846_v40, %v748_v33  ;;  %v272_v43 = vpop.f32.mrb[3].mxu0  ;;  %v575_v40 = vld [vmem:[%s1319_s8 + $0x48] sm:$0xff] }
 0x1cb   :  { %v317_v44 = vrot.slane %v301_v39, 1  ;;  %v273_v45 = vadd.f32 %v748_v33, %v272_v43  ;;  %v576_v43 = vld [vmem:[%s1319_s8 + $0x50] sm:$0xff] }
 0x1cc   :  { %v304_v46 = vmax.f32 %v278_v42, 0.0  ;;  %v1017_v42 = vmov 0.0  }
 0x1cd   :  { %v303_v47 = vmax.f32 %v273_v45, 0.0  ;;  %v849_v48 = vpop.f32.mrb[4].mxu0  ;;  %v319_v49 = vsel %vm101_vm1, %v317_v44, %v318_v41  ;;  %901 = vmatprep.mubr.msk.f32.mxu0 %vm1016_vm6, %v1017_v42 }
 0x1ce   :  { %v322_v50 = vrot.slane %v304_v46, 1  ;;  %v288_v51 = vadd.f32 %v849_v48, %v748_v33  ;;  %336 = vrot.lane.b32.xlu0 %v319_v49, %s1014_s5  ;;  %v282_v52 = vpop.f32.mrb[5].mxu0 }
 0x1cf   :  { %v320_v53 = vrot.slane %v303_v47, 1  ;;  %v283_v54 = vadd.f32 %v748_v33, %v282_v52 }
 0x1d0   :  { %v306_v55 = vmax.f32 %v288_v51, 0.0 }
 0x1d1   :  { %v305_v56 = vmax.f32 %v283_v54, 0.0  ;;  %v852_v57 = vpop.f32.mrb[6].mxu0  ;;  %v323_v58 = vsel %vm101_vm1, %v320_v53, %v322_v50  ;;  %v321_v59 = vsel %vm101_vm1, %v318_v41, %v320_v53 }
 0x1d2   :  { %v326_v60 = vrot.slane %v306_v55, 1  ;;  %v298_v61 = vadd.f32 %v852_v57, %v748_v33  ;;  %340 = vrot.lane.b32.xlu0 %v323_v58, %s1014_s5  ;;  %338 = vrot.lane.b32.xlu1 %v321_v59, %s1014_s5  ;;  %v292_v62 = vpop.f32.mrb[7].mxu0 }
 0x1d3   :  { %v324_v63 = vrot.slane %v305_v56, 1  ;;  %v293_v0 = vadd.f32 %v748_v33, %v292_v62  ;;  %v572_v33 = vld [vmem:[%s1319_s8 + $0x30] sm:$0xff] }
 0x1d4   :  { %v308_v1 = vmax.f32 %v298_v61, 0.0  ;;  %v964_v36 = vpack.c.bf16 %v573_v34, %v572_v33 }
 0x1d5   :  { %v307_v2 = vmax.f32 %v293_v0, 0.0  ;;  %v327_v3 = vsel %vm101_vm1, %v324_v63, %v326_v60  ;;  %v325_v4 = vsel %vm101_vm1, %v322_v50, %v324_v63 }
 0x1d6   :  { %v330_v5 = vrot.slane %v308_v1, 1  ;;  %344 = vrot.lane.b32.xlu0 %v327_v3, %s1014_s5  ;;  %342 = vrot.lane.b32.xlu1 %v325_v4, %s1014_s5 }
 0x1d7   :  { %v328_v6 = vrot.slane %v307_v2, 1  ;;  %965 = vmatpush3.bf16.msra.mxu0 %v964_v36 }
 0x1d8   :  { %v334_v9 = vsel %vm101_vm1, %v330_v5, %v317_v44  ;;  %966 = vmatprep.subr.bf16.mxu0 %v1015_v29  ;;  %v577_v44 = vld [vmem:[%s1319_s8 + $0x58] sm:$0xff] }
 0x1d9   :  { %v331_v7 = vsel %vm101_vm1, %v328_v6, %v330_v5  ;;  %v329_v8 = vsel %vm101_vm1, %v326_v60, %v328_v6  ;;  %v970_v45 = vpack.c.bf16 %v577_v44, %v576_v43 }
 0x1da   :  { %348 = vrot.lane.b32.xlu0 %v331_v7, %s1014_s5  ;;  %346 = vrot.lane.b32.xlu1 %v329_v8, %s1014_s5 }
 0x1de   :  { %350 = vrot.lane.b32.xlu1 %v334_v9, %s1014_s5  ;;  %s1018_s5 = smov [#allocation2]  }
 0x1df   :  { %s740_s6 = sshll.u32 %s1018_s5, 4  ;;  %s741_s6 = int_to_ptr.vmem [resolvable:$true] %s740_s6 }
 0x1e0   :  { %s988_s23 = scalar_lea.vmem %s741_s6, 32  ;;  %p993_p1 = scmp.lt.s32.totalorder %s741_s6, %s741_s6 }
 0x1e1   :  { %p989_p0 = scmp.ne.s32.totalorder %s741_s6, %s988_s23  ;;  %p994_p2 = scmp.lt.s32.totalorder %s988_s23, %s988_s23 }
 0x1e3   :  { %p995_p3 = por %p994_p2, %p993_p1 }
 0x1e5   :  { %p996_p4 = pnand %p995_p3, %p989_p0 }
 0x240   :  { %v337_v10 = vpop.permute.xlu0 %336 }
 0x241   :  { %v361_v11 = vsel %vm360_vm4, %v301_v39, %v337_v10  ;;  %v574_v39 = vld [vmem:[%s1319_s8 + $0x40] sm:$0xff] }
 0x242   :  { %877 = vmatprep.mubr.msk.f32.mxu1 %vm388_vm5, %v361_v11  ;;  %v967_v41 = vpack.c.bf16 %v575_v40, %v574_v39 }
 0x244   :  { %v339_v12 = vpop.permute.xlu1 %338  ;;  %v341_v13 = vpop.permute.xlu0 %340  ;;  %968 = vmatpush3.bf16.msra.mxu0 %v967_v41 }
 0x245   :  { %v362_v14 = vsel %vm360_vm4, %v302_v38, %v339_v12  ;;  %v363_v15 = vsel %vm360_vm4, %v303_v47, %v341_v13  ;;  %v979_v38 = vpack.c.bf16 %v571_v37, %v570_v35  ;;  %969 = vmatprep.subr.bf16.mxu0 %v1015_v29 }
 0x246   :  { %878 = vmatmul.mubr.msk.f32.vlgmr.msra.gmra.mrb[0].mxu1 %vm388_vm5, %v362_v14 }
 0x247   :  { %880 = vmatprep.mubr.msk.f32.mxu1 %vm388_vm5, %v363_v15  ;;  %974 = vmatpush3.bf16.msra.mxu1 %v973_v28 }
 0x248   :  { %v343_v16 = vpop.permute.xlu1 %342  ;;  %v345_v17 = vpop.permute.xlu0 %344  ;;  %975 = vmatprep.subr.bf16.mxu1 %v1015_v29  ;;  %971 = vmatpush3.bf16.msra.mxu0 %v970_v45 }
 0x249   :  { %v364_v18 = vsel %vm360_vm4, %v304_v46, %v343_v16  ;;  %v365_v19 = vsel %vm360_vm4, %v305_v56, %v345_v17  ;;  %v757_v46 = vld [vmem:[%s1318_s7] ss:$0 sm:$0xff] }
 0x24a   :  { %881 = vmatmul.mubr.msk.f32.gmra.mrb[2].mxu1 %vm388_vm5, %v364_v18 }
 0x24b   :  { %883 = vmatprep.mubr.msk.f32.mxu1 %vm388_vm5, %v365_v19  ;;  %977 = vmatpush3.bf16.msra.mxu1 %v976_v32 }
 0x24c   :  { %v347_v20 = vpop.permute.xlu1 %346  ;;  %v349_v21 = vpop.permute.xlu0 %348  ;;  %978 = vmatprep.subr.bf16.mxu1 %v1015_v29 }
 0x24d   :  { %v366_v22 = vsel %vm360_vm4, %v306_v55, %v347_v20  ;;  %v367_v23 = vsel %vm360_vm4, %v307_v2, %v349_v21 }
 0x24e   :  { %884 = vmatmul.mubr.msk.f32.gmra.mrb[4].mxu1 %vm388_vm5, %v366_v22 }
 0x24f   :  { %886 = vmatprep.mubr.msk.f32.mxu1 %vm388_vm5, %v367_v23  ;;  %980 = vmatpush3.bf16.msra.mxu1 %v979_v38 }
 0x250   :  { %v351_v24 = vpop.permute.xlu1 %350 }
 0x251   :  { %v368_v25 = vsel %vm360_vm4, %v308_v1, %v351_v24 }
 0x252   :  { %887 = vmatmul.mubr.msk.f32.gmra.mrb[6].mxu1 %vm388_vm5, %v368_v25 }
 0x253   :  { %916 = vmatprep.mubr.msk.f32.mxu1 %vm1016_vm6, %v1017_v42 }
 0x319   :  { %v879_v47 = vpop.f32.mrb[0].mxu1 }
 0x31a   :  { %v485_v48 = vadd.f32 %v879_v47, %v757_v46  ;;  %v479_v49 = vpop.f32.mrb[1].mxu1 }
 0x31b   :  { %v480_v50 = vadd.f32 %v757_v46, %v479_v49 }
 0x31c   :  { %v519_v51 = vmax.f32 %v485_v48, 0.0  ;;  %v768_v48 = vld [vmem:[%s1320_s9] ss:$0 sm:$0xff] }
 0x31d   :  { %v518_v52 = vmax.f32 %v480_v50, 0.0  ;;  %v882_v53 = vpop.f32.mrb[2].mxu1 }
 0x31e   :  { %v528_v54 = vsel %vm527_vm7, %v519_v51, -inf  ;;  %v495_v55 = vadd.f32 %v882_v53, %v757_v46  ;;  %v489_v56 = vpop.f32.mrb[3].mxu1 }
 0x31f   :  { %v526_v57 = vsel %vm360_vm4, %v518_v52, -inf  ;;  %v490_v58 = vadd.f32 %v757_v46, %v489_v56 }
 0x320   :  { %v529_v59 = vmax.f32 %v526_v57, %v528_v54  ;;  %v521_v60 = vmax.f32 %v495_v55, 0.0 }
 0x321   :  { %v520_v61 = vmax.f32 %v490_v58, 0.0  ;;  %v885_v62 = vpop.f32.mrb[4].mxu1 }
 0x322   :  { %v530_v63 = vrot.slane %v529_v59, 4  ;;  %v537_v0 = vsel %vm527_vm7, %v521_v60, -inf  ;;  %v505_v1 = vadd.f32 %v885_v62, %v757_v46  ;;  %v499_v2 = vpop.f32.mrb[5].mxu1 }
 0x323   :  { %v536_v3 = vsel %vm360_vm4, %v520_v61, -inf  ;;  %v500_v4 = vadd.f32 %v757_v46, %v499_v2 }
 0x324   :  { %v531_v5 = vmax.f32 %v529_v59, %v530_v63  ;;  %v538_v6 = vmax.f32 %v536_v3, %v537_v0  ;;  %v523_v7 = vmax.f32 %v505_v1, 0.0 }
 0x325   :  { %v522_v8 = vmax.f32 %v500_v4, 0.0  ;;  %v888_v9 = vpop.f32.mrb[6].mxu1 }
 0x326   :  { %v532_v10 = vrot.slane %v531_v5, 2  ;;  %v539_v11 = vrot.slane %v538_v6, 4  ;;  %v546_v12 = vsel %vm527_vm7, %v523_v7, -inf  ;;  %v515_v13 = vadd.f32 %v888_v9, %v757_v46  ;;  %v509_v14 = vpop.f32.mrb[7].mxu1 }
 0x327   :  { %v545_v15 = vsel %vm360_vm4, %v522_v8, -inf  ;;  %v510_v16 = vadd.f32 %v757_v46, %v509_v14 }
 0x328   :  { %v533_v17 = vmax.f32 %v531_v5, %v532_v10  ;;  %v540_v18 = vmax.f32 %v538_v6, %v539_v11  ;;  %v547_v19 = vmax.f32 %v545_v15, %v546_v12  ;;  %v525_v20 = vmax.f32 %v515_v13, 0.0 }
 0x329   :  { %v524_v21 = vmax.f32 %v510_v16, 0.0 }
 0x32a   :  { %v541_v22 = vrot.slane %v540_v18, 2  ;;  %v548_v23 = vrot.slane %v547_v19, 4  ;;  %v555_v24 = vsel %vm527_vm7, %v525_v20, -inf  ;;  %v534_v26 = vrot.slane %v533_v17, 1 }
 0x32b   :  { %v554_v25 = vsel %vm360_vm4, %v524_v21, -inf }
 0x32c   :  { %v542_v27 = vmax.f32 %v540_v18, %v541_v22  ;;  %v549_v28 = vmax.f32 %v547_v19, %v548_v23  ;;  %v556_v29 = vmax.f32 %v554_v25, %v555_v24  ;;  %v535_v33 = vmax.f32 %v533_v17, %v534_v26 }
 0x32e   :  { %v543_v30 = vrot.slane %v542_v27, 1  ;;  %v550_v31 = vrot.slane %v549_v28, 2  ;;  %v557_v32 = vrot.slane %v556_v29, 4 }
 0x330   :  { %v544_v34 = vmax.f32 %v542_v27, %v543_v30  ;;  %v551_v35 = vmax.f32 %v549_v28, %v550_v31  ;;  %v558_v36 = vmax.f32 %v556_v29, %v557_v32 }
 0x332   :  { %v559_v37 = vrot.slane %v558_v36, 2  ;;  %v564_v38 = vsel %vm563_vm8, %v535_v33, %v544_v34  ;;  %v552_v39 = vrot.slane %v551_v35, 1 }
 0x333   :  { %917 = vmatmul.mubr.msk.f32.vlgmr.msra.gmra.mrb[8].mxu1 %vm360_vm4, %v564_v38 }
 0x334   :  { %v560_v40 = vmax.f32 %v558_v36, %v559_v37  ;;  %v553_v42 = vmax.f32 %v551_v35, %v552_v39 }
 0x336   :  { %v561_v41 = vrot.slane %v560_v40, 1 }
 0x338   :  { %v562_v43 = vmax.f32 %v560_v40, %v561_v41 }
 0x33a   :  { %v565_v44 = vsel %vm563_vm8, %v553_v42, %v562_v43 }
 0x33b   :  { %902 = vmatmul.mubr.msk.f32.vlgmr.msra.gmra.mrb[8].mxu0 %vm360_vm4, %v565_v44 }
 0x406   :  { %v720_v45 = vpop.f32.mrb[8].mxu1 }
 0x407   :  { %v918_v46 = vpop.f32.mrb[9].mxu1 }
 0x40e   :  { %v647_v47 = vpop.f32.mrb[8].mxu0 }
 0x40f   :  { %v721_v49 = vadd.f32 %v720_v45, %v647_v47  ;;  %v903_v50 = vpop.f32.mrb[9].mxu0 }
 0x411   :  { %v731_v51 = vadd.f32 %v768_v48, %v721_v49 }
 0x413   :  { %733 = vst.msk [vmem:[#allocation2] sm:$0x3] %vm732_vm9, %v731_v51 }
 0x414   :  { %999 = shalt.err (!%p996_p4)
}
 0x415   :  { %s1000_s25 = scalar_lea.hbm %s1321_s10, 32 }
 0x416   :  { %p1001_p5 = scmp.ne.s32.totalorder %s1321_s10, %s1000_s25  ;;  %p1004_p6 = scmp.lt.u32.totalorder %s1000_s25, %s1321_s10 }
 0x418   :  { %p1006_p7 = pnand %p1004_p6, %p1001_p5 }
 0x41a   :  { %1009 = shalt.err (!%p1006_p7)
}
 0x41b   :  { %743 = dma.vmem_to_hbm [thread:$0]  %s741_s6, 32, %s1321_s10, [#allocation3]  }
 0x41c   :  { %1010 = dma.done.wait [#allocation3], 32  }
 0x41d   :  { %1011 = vsyncadd [#allocation3], 4294967264 }
 0x41e   :  { %747 = vsyncpa [#allocation3], 1 }

</bundles_post_ra>
